<compile_context>
chip_gen: v7x
topology: tpu7x:2x2x1
jax: 0.10.0
libtpu: 0.0.40
codegen_flags: <defaults>
</compile_context>

<pallas_src>
import math

import jax
import jax.numpy as jnp
from jax.experimental import pallas as pl
from jax.experimental.pallas import tpu as pltpu

INV_SQRT2 = 1.0 / math.sqrt(2.0)


def mlp_kernel(x_ref, w1_ref, b1_ref, w2_ref, b2_ref, o_ref):
    # x_ref: (Cin, Lt)   w1_ref: (Cmid, Cin)   b1_ref: (Cmid, 1)
    # w2_ref: (Cout, Cmid)   b2_ref: (Cout, 1)   o_ref: (Cout, Lt)
    x = x_ref[...]
    h = jnp.dot(w1_ref[...], x, preferred_element_type=jnp.float32) + b1_ref[...]
    # exact (erf-based) GELU in f32, matching torch.nn.functional.gelu default
    h = 0.5 * h * (1.0 + jax.lax.erf(h * INV_SQRT2))
    y = jnp.dot(w2_ref[...], h, preferred_element_type=jnp.float32) + b2_ref[...]
    o_ref[...] = y.astype(o_ref.dtype)


def _vmem_budget_bytes():
    """~70% of physical VMEM; conservative 64 MiB (v7x) fallback off-device."""
    phys = 64 << 20
    try:
        info = pltpu.get_tpu_info()
        phys = int(getattr(info, "vmem_capacity_bytes", phys))
    except Exception:
        pass
    return int(0.70 * phys)


def mlp_pallas(x, w1, b1, w2, b2, *, l_tile=65536):
    """Per-position MLP on an NCL tensor.

    x  : (B, Cin, L) float32
    w1 : (Cmid, Cin)   -- PyTorch Conv1d(k=1) weight, squeezed (out, in)
    b1 : (Cmid,)
    w2 : (Cout, Cmid)
    b2 : (Cout,)
    """
    B, Cin, L = x.shape
    Cmid = w1.shape[0]
    Cout = w2.shape[0]
    itemsize = jnp.dtype(x.dtype).itemsize

    budget = _vmem_budget_bytes()

    # VMEM-aware lane-tile cap:
    #   per lane: x (double-buffered) + out (double-buffered) + generous
    #   headroom (~6x Cmid f32) for the (Cmid, lt) intermediate and the
    #   erf-GELU polynomial temporaries.
    per_lane = itemsize * (2 * Cin + 2 * Cout + 6 * Cmid)
    w_bytes = 2 * itemsize * (Cmid * Cin + Cmid + Cout * Cmid + Cout)
    avail = max(0, budget - w_bytes - (2 << 20))
    lt_cap = max(128, (avail // per_lane) // 128 * 128)

    # Requested tile, rounded to the lane width and clamped to the VMEM cap.
    lt = max(128, min(int(l_tile), lt_cap))
    lt -= lt % 128

    if lt >= L:
        # Full-extent lane block (always a legal block shape).
        lt = L
        # v7x megacore: avoid a degenerate (1, 1) grid — split L into >= 2
        # lane tiles (multiples of 128) when the batch axis can't provide
        # parallel grid steps.
        if B == 1 and L >= 256:
            half = 128 * pl.cdiv(pl.cdiv(L, 2), 128)
            if half < L:
                lt = half

    # No wrapper-side padding: grid = cdiv(L, lt); the last (partial) block is
    # handled by Pallas with masked out-of-bounds writes.  Compute is strictly
    # per-column, so unspecified padding lanes never contaminate valid lanes.
    grid = (B, pl.cdiv(L, lt))

    out = pl.pallas_call(
        mlp_kernel,
        out_shape=jax.ShapeDtypeStruct((B, Cout, L), x.dtype),
        grid_spec=pltpu.PrefetchScalarGridSpec(
            num_scalar_prefetch=0,
            grid=grid,
            in_specs=[
                # NCL consumed directly; leading batch dim squeezed out.
                pl.BlockSpec((None, Cin, lt), lambda b, l: (b, 0, l)),
                # Weights / biases: full arrays, constant index_map (resident,
                # no re-DMA across grid steps).  At real FNO widths consider
                # pipeline_mode=pl.Buffered(1) to single-buffer them;
                # irrelevant at 4/32/4 channels.
                pl.BlockSpec((Cmid, Cin), lambda b, l: (0, 0)),
                pl.BlockSpec((Cmid, 1), lambda b, l: (0, 0)),
                pl.BlockSpec((Cout, Cmid), lambda b, l: (0, 0)),
                pl.BlockSpec((Cout, 1), lambda b, l: (0, 0)),
            ],
            # Lane-dense output block (last dim = lt, multiple of 128 or full L).
            out_specs=pl.BlockSpec((None, Cout, lt), lambda b, l: (b, 0, l)),
        ),
        compiler_params=pltpu.CompilerParams(
            dimension_semantics=("parallel", "parallel"),
            vmem_limit_bytes=budget,
        ),
    )(x, w1, b1.reshape(Cmid, 1), w2, b2.reshape(Cout, 1))

    return out


def init_params(key, in_channels, mid_channels, out_channels, dtype=jnp.float32):
    """Deterministic init mirroring Conv1d(k=1) parameter shapes.

    PyTorch Conv1d weight is (out, in, 1); we store the squeezed (out, in)
    matrix so the kernel can do W @ x directly in the L-on-lanes layout.
    """
    k1, k2, k3, k4 = jax.random.split(key, 4)
    bound1 = 1.0 / math.sqrt(in_channels)
    bound2 = 1.0 / math.sqrt(mid_channels)
    w1 = jax.random.uniform(k1, (mid_channels, in_channels), dtype, -bound1, bound1)
    b1 = jax.random.uniform(k2, (mid_channels,), dtype, -bound1, bound1)
    w2 = jax.random.uniform(k3, (out_channels, mid_channels), dtype, -bound2, bound2)
    b2 = jax.random.uniform(k4, (out_channels,), dtype, -bound2, bound2)
    return w1, b1, w2, b2


def mlp_reference(x, w1, b1, w2, b2):
    """Pure-JAX reference of the PyTorch forward (for the correctness check)."""
    h = jnp.einsum("bcl,mc->bml", x, w1) + b1[None, :, None]
    h = 0.5 * h * (1.0 + jax.lax.erf(h * INV_SQRT2))
    y = jnp.einsum("bml,om->bol", h, w2) + b2[None, :, None]
    return y


if __name__ == "__main__":
    # Small shapes consistent with MLP(in_channels=4, out_channels=4, mid_channels=32)
    B, Cin, Cmid, Cout, L = 2, 4, 32, 4, 16

    key = jax.random.PRNGKey(0)
    kx, kp, kx2, kx3 = jax.random.split(key, 4)
    x = jax.random.normal(kx, (B, Cin, L), dtype=jnp.float32)
    w1, b1, w2, b2 = init_params(kp, Cin, Cmid, Cout)

    # 1) Small-L path: full-extent lane block.
    y = jax.block_until_ready(mlp_pallas(x, w1, b1, w2, b2))
    y_ref = mlp_reference(x, w1, b1, w2, b2)
    assert y.shape == (B, Cout, L)
    assert jnp.allclose(y, y_ref, atol=1e-5, rtol=1e-5), "mismatch vs reference"

    # 2) Tiled + ragged-L path (no wrapper pad/slice; masked last block).
    L2 = 300
    x2 = jax.random.normal(kx2, (B, Cin, L2), dtype=jnp.float32)
    y2 = jax.block_until_ready(mlp_pallas(x2, w1, b1, w2, b2, l_tile=128))
    y2_ref = mlp_reference(x2, w1, b1, w2, b2)
    assert y2.shape == (B, Cout, L2)
    assert jnp.allclose(y2, y2_ref, atol=1e-5, rtol=1e-5), "mismatch (tiled path)"

    # 3) B == 1 path: L is split so the grid has >= 2 steps (v7x megacore).
    L3 = 512
    x3 = jax.random.normal(kx3, (1, Cin, L3), dtype=jnp.float32)
    y3 = jax.block_until_ready(mlp_pallas(x3, w1, b1, w2, b2))
    y3_ref = mlp_reference(x3, w1, b1, w2, b2)
    assert y3.shape == (1, Cout, L3)
    assert jnp.allclose(y3, y3_ref, atol=1e-5, rtol=1e-5), "mismatch (B=1 split path)"

    print("KERNEL_OK")
</pallas_src>

<mosaic_0001>
module attributes {stable_mosaic.version = 11 : i64} {
  func.func @mlp_kernel(%arg0: i32, %arg1: i32, %arg2: memref<1x4x16xf32, #tpu.memory_space<vmem>>, %arg3: memref<32x4xf32, #tpu.memory_space<vmem>>, %arg4: memref<32x1xf32, #tpu.memory_space<vmem>>, %arg5: memref<4x32xf32, #tpu.memory_space<vmem>>, %arg6: memref<4x1xf32, #tpu.memory_space<vmem>>, %arg7: memref<1x4x16xf32, #tpu.memory_space<vmem>>) attributes {dimension_semantics = [#tpu.dimension_semantics<parallel>, #tpu.dimension_semantics<parallel>], iteration_bounds = array<i64: 2, 1>, scalar_prefetch = 0 : i64, scratch_operands = 0 : i64, tpu.core_type = #tpu.core_type<tc>, window_params = [{transform_indices = @transform_0, window_bounds = array<i64: 1, 4, 16>}, {pipeline_mode = #tpu.pipeline_mode<synchronous>, transform_indices = @transform_1, window_bounds = array<i64: 32, 4>}, {pipeline_mode = #tpu.pipeline_mode<synchronous>, transform_indices = @transform_2, window_bounds = array<i64: 32, 1>}, {pipeline_mode = #tpu.pipeline_mode<synchronous>, transform_indices = @transform_3, window_bounds = array<i64: 4, 32>}, {pipeline_mode = #tpu.pipeline_mode<synchronous>, transform_indices = @transform_4, window_bounds = array<i64: 4, 1>}, {transform_indices = @transform_5, window_bounds = array<i64: 1, 4, 16>}]} {
    %c0 = arith.constant 0 : index
    %c0_0 = arith.constant 0 : index
    %c0_1 = arith.constant 0 : index
    %0 = vector.load %arg2[%c0, %c0_0, %c0_1] : memref<1x4x16xf32, #tpu.memory_space<vmem>>, vector<1x4x16xf32>
    %1 = vector.shape_cast %0 : vector<1x4x16xf32> to vector<4x16xf32>
    %c0_2 = arith.constant 0 : index
    %c0_3 = arith.constant 0 : index
    %2 = vector.load %arg3[%c0_2, %c0_3] : memref<32x4xf32, #tpu.memory_space<vmem>>, vector<32x4xf32>
    %cst = arith.constant dense<0.000000e+00> : vector<32x16xf32>
    %3 = tpu.matmul %2, %1, %cst {dimension_numbers = #tpu.dot_dimension_numbers<[1], [0], [0], [1], [0, 0, 1, 1], [], []>} : vector<32x4xf32>, vector<4x16xf32>, vector<32x16xf32> -> vector<32x16xf32>
    %c0_4 = arith.constant 0 : index
    %c0_5 = arith.constant 0 : index
    %4 = vector.load %arg4[%c0_4, %c0_5] : memref<32x1xf32, #tpu.memory_space<vmem>>, vector<32x1xf32>
    %5 = vector.broadcast %4 : vector<32x1xf32> to vector<32x16xf32>
    %6 = arith.addf %3, %5 : vector<32x16xf32>
    %cst_6 = arith.constant 5.000000e-01 : f32
    %7 = vector.broadcast %cst_6 : f32 to vector<32x16xf32>
    %8 = arith.mulf %7, %6 : vector<32x16xf32>
    %cst_7 = arith.constant 0.707106769 : f32
    %9 = vector.broadcast %cst_7 : f32 to vector<32x16xf32>
    %10 = arith.mulf %6, %9 : vector<32x16xf32>
    %11 = math.erf %10 : vector<32x16xf32>
    %cst_8 = arith.constant 1.000000e+00 : f32
    %12 = vector.broadcast %cst_8 : f32 to vector<32x16xf32>
    %13 = arith.addf %12, %11 : vector<32x16xf32>
    %14 = arith.mulf %8, %13 : vector<32x16xf32>
    %c0_9 = arith.constant 0 : index
    %c0_10 = arith.constant 0 : index
    %15 = vector.load %arg5[%c0_9, %c0_10] : memref<4x32xf32, #tpu.memory_space<vmem>>, vector<4x32xf32>
    %cst_11 = arith.constant dense<0.000000e+00> : vector<4x16xf32>
    %16 = tpu.matmul %15, %14, %cst_11 {dimension_numbers = #tpu.dot_dimension_numbers<[1], [0], [0], [1], [0, 0, 1, 1], [], []>} : vector<4x32xf32>, vector<32x16xf32>, vector<4x16xf32> -> vector<4x16xf32>
    %c0_12 = arith.constant 0 : index
    %c0_13 = arith.constant 0 : index
    %17 = vector.load %arg6[%c0_12, %c0_13] : memref<4x1xf32, #tpu.memory_space<vmem>>, vector<4x1xf32>
    %18 = vector.broadcast %17 : vector<4x1xf32> to vector<4x16xf32>
    %19 = arith.addf %16, %18 : vector<4x16xf32>
    %c0_14 = arith.constant 0 : index
    %c0_15 = arith.constant 0 : index
    %c0_16 = arith.constant 0 : index
    %20 = vector.load %arg7[%c0_14, %c0_15, %c0_16] : memref<1x4x16xf32, #tpu.memory_space<vmem>>, vector<1x4x16xf32>
    %21 = vector.shape_cast %20 : vector<1x4x16xf32> to vector<4x16xf32>
    %22 = vector.shape_cast %19 : vector<4x16xf32> to vector<1x4x16xf32>
    tpu.vector_store %arg7[%c0_14, %c0_15, %c0_16], %22 {strides = array<i32>} : memref<1x4x16xf32, #tpu.memory_space<vmem>>, vector<1x4x16xf32>,
    return
  }
  func.func @transform_0(%arg0: i32, %arg1: i32) -> (i32, i32, i32) {
    %c0_i32 = arith.constant 0 : i32
    %c0_i32_0 = arith.constant 0 : i32
    return %arg0, %c0_i32, %arg1 : i32, i32, i32
  }
  func.func @transform_1(%arg0: i32, %arg1: i32) -> (i32, i32) {
    %c0_i32 = arith.constant 0 : i32
    %c0_i32_0 = arith.constant 0 : i32
    %c0_i32_1 = arith.constant 0 : i32
    return %c0_i32, %c0_i32_0 : i32, i32
  }
  func.func @transform_2(%arg0: i32, %arg1: i32) -> (i32, i32) {
    %c0_i32 = arith.constant 0 : i32
    %c0_i32_0 = arith.constant 0 : i32
    %c0_i32_1 = arith.constant 0 : i32
    return %c0_i32, %c0_i32_0 : i32, i32
  }
  func.func @transform_3(%arg0: i32, %arg1: i32) -> (i32, i32) {
    %c0_i32 = arith.constant 0 : i32
    %c0_i32_0 = arith.constant 0 : i32
    %c0_i32_1 = arith.constant 0 : i32
    return %c0_i32, %c0_i32_0 : i32, i32
  }
  func.func @transform_4(%arg0: i32, %arg1: i32) -> (i32, i32) {
    %c0_i32 = arith.constant 0 : i32
    %c0_i32_0 = arith.constant 0 : i32
    %c0_i32_1 = arith.constant 0 : i32
    return %c0_i32, %c0_i32_0 : i32, i32
  }
  func.func @transform_5(%arg0: i32, %arg1: i32) -> (i32, i32, i32) {
    %c0_i32 = arith.constant 0 : i32
    %c0_i32_0 = arith.constant 0 : i32
    return %arg0, %c0_i32, %arg1 : i32, i32, i32
  }
}

</mosaic_0001>

<bundles_post_ra>
// kernel: tpu_custom_call.1
= control target key start
LH: loop header
LB: loop body
LE: loop exit
PB: predicated region body
PF: predicated region fallthrough
CT: control target
= control target key end

     0   :  { %10 = vsyncpa [#allocation3], 0  ;;  %s947_s0 = inlined_call_operand.vmem [shape: f32[2,4,16], index: 0, kind: input, shape index: {}]   ;;  %s948_s1 = inlined_call_operand.vmem [shape: f32[32,4], index: 1, kind: input, shape index: {}]   ;;  %s949_s2 = inlined_call_operand.vmem [shape: f32[32,1], index: 2, kind: input, shape index: {}]   ;;  %s950_s3 = inlined_call_operand.vmem [shape: f32[4,32], index: 3, kind: input, shape index: {}]   ;;  %s951_s4 = inlined_call_operand.vmem [shape: f32[4,1], index: 4, kind: input, shape index: {}]   ;;  %s952_s5 = inlined_call_operand.hbm [shape: f32[2,4,16], index: 5, kind: output, shape index: {}]  }
   0x1   :  { %12 = vsyncpa [#allocation3 + $0x1], 0  ;;  %s801_s18 = smov 0   ;;  %s803_s19 = smov 0  }
   0x2   :  { %s805_s20 = smov 0   ;;  %s807_s21 = smov 0  }
   0x3   :  { %s809_s22 = smov 0   ;;  %s811_s23 = smov 0  }
   0x4 LB: > { %s565_s24 = sadd.s32 4294967295, %s764_s23   ;;  %s566_s25 = sadd.s32 4294967294, %s764_s23   ;;  %s764_s23 = sphi %s811_s23, %s18_s23   ;;  %s760_s22 = sphi %s809_s22, %s959_s22   ;;  %s756_s21 = sphi %s807_s21, %s958_s21   ;;  %s752_s20 = sphi %s805_s20, %s957_s20   ;;  %s748_s19 = sphi %s803_s19, %s956_s19   ;;  %s744_s18 = sphi %s801_s18, %s955_s18  }
   0x5   : > { %s30_s26 = sadd.s32 1, %s760_s22  ;;  %s151_s27 = sadd.s32 1, %s752_s20 }
   0x6   : > { %p32_p0 = scmp.ge.s32.totalorder %s30_s26, 2  ;;  %p161_p1 = scmp.ne.s32.totalorder %s752_s20, %s748_s19 }
   0x7   : > { %p162_p2 = scmp.eq.s32.totalorder %s565_s24, 1  ;;  %p167_p3 = scmp.ne.s32.totalorder %s748_s19, %s744_s18 }
   0x8   : > { %s961_s26 = smov (%p32_p0, %s30_s26), 0  ;;  %p168_p5 = scmp.eq.s32.totalorder %s566_s25, 1 }
   0x9   : > { %p841_p4 = por %p162_p2, %p161_p1  ;;  %s146_s29 = ssub.s32 %s760_s22, %s961_s26 }
   0xa   : > { %p569_p6 = scmp.ge.s32.totalorder %s764_s23, 1  ;;  %p149_p7 = scmp.eq.s32.totalorder %s146_s29, 0 }
   0xb   : > { %p848_p8 = por %p168_p5, %p167_p3  ;;  %p208_p9 = scmp.lt.s32.totalorder %s764_s23, 3 }
   0xc   : > { %s854_s6 = scalar_select %p149_p7, %s752_s20, %s151_s27  }
   0xd   : > { %p209_p10 = pnand %p569_p6, %p208_p9 }
   0xe   : > { %p238_p11 = scmp.lt.s32.totalorder (!%p209_p10), %s756_s21, 1  ;;  %v246_v0 = vld [vmem:[%s948_s1] sm:$0xff] (!%p209_p10)  ;;  %vm274_vm0 = vcmask (!%p209_p10), 31744   ;;  %v766_v2 = vmov (!%p209_p10), 0   ;;  %v252_v3 = vld [vmem:[%s949_s2 + $0x10] sm:$0xff] (!%p209_p10)  ;;  %vm287_vm1 = vcmask (!%p209_p10), 1043456  }
   0xf   : > { %212 = sbr.rel (%p209_p10) target bundleno = 498 (0x1f2), region = 40  ;;  %594 = vmatprep.mubr.msk.f32.mxu0 (!%p209_p10), %vm274_vm0, %v246_v0  ;;  %v250_v1 = vld [vmem:[%s949_s2] sm:$0xff] (!%p209_p10)  ;;  %676 = vset.pattern.permute.xlu0 (!%p209_p10), %v766_v2  ;;  %v251_v4 = vld [vmem:[%s949_s2 + $0x8] sm:$0xff] (!%p209_p10)  ;;  %v253_v5 = vld [vmem:[%s949_s2 + $0x18] sm:$0xff] (!%p209_p10)  ;;  %v767_v11 = vmov (!%p209_p10), 0.0|0.0   ;;  %vm768_vm2 = vmmov (!%p209_p10), 0  }
  0x10   : > { %677 = vset.pattern.permute.xlu1 (!%p209_p10), %v766_v2  ;;  %256 = vperm.xlu0 (!%p209_p10), %676, %v250_v1   ;;  %v247_v7 = vld [vmem:[%s948_s1 + $0x8] sm:$0xff] (!%p209_p10)  ;;  %v248_v8 = vld [vmem:[%s948_s1 + $0x10] sm:$0xff] (!%p209_p10)  ;;  %v397_v9 = vld [vmem:[%s951_s4] sm:$0xf] (!%p209_p10)  ;;  %v769_v12 = vmov (!%p209_p10), 0.0   ;;  %vm403_vm3 = vcmask (!%p209_p10), 261120  }
  0x11   : > { %266 = vperm.xlu1 (!%p209_p10), %677, %v252_v3   ;;  %v249_v10 = vld [vmem:[%s948_s1 + $0x18] sm:$0xff] (!%p209_p10)  ;;  %611 = vmatprep.subr.bf16.mxu1 (!%p209_p10), %v767_v11  ;;  %v396_v47 = vld [vmem:[%s950_s3] sm:$0xf] (!%p209_p10)  ;;  %s235_s17 = sand.u32 (!%p209_p10), 1, %s748_s19   ;;  %vm477_vm4 = vcmask (!%p209_p10), 125952  }
  0x12   : > { %608 = vmatprep.mubr.msk.f32.mxu1 (!%p209_p10), %vm768_vm2, %v769_v12  ;;  %s570_s24 = sshll.u32 (!%p209_p10), %s235_s17, 2  ;;  %s480_s10 = scalar_lea.sflag (!%p209_p10), [#allocation3], %s235_s17 }
  0x13   : > { %s237_s27 = scalar_lea.vmem (!%p209_p10), [#allocation2], %s570_s24 }
  0x14   : > { %261 = vperm.xlu0 (!%p209_p10), %676, %v251_v4   ;;  %s494_s29 = sshll.u32 (!%p209_p10), %s237_s27, 4  ;;  %s902_s29 = int_to_ptr.vmem [resolvable:$true] %s494_s29 }
  0x15   : > { %271 = vperm.xlu1 (!%p209_p10), %677, %v253_v5  }
  0x16   : > { %s239_s11 = scalar_select %p238_p11, %s756_s21, 1 }
  0x18   : > { %s571_s14 = sshll.u32 %s239_s11, 2  ;;  %400 = vperm.xlu0 %676, %v397_v9   ;;  %s770_s11 = smov [#allocation2]  }
  0x19   : > { %s244_s25 = scalar_lea.vmem %s947_s0, %s571_s14  ;;  %s690_s12 = sshll.u32 %s770_s11, 4  ;;  %s691_s12 = int_to_ptr.vmem [resolvable:$false] %s690_s12 }
  0x1a   : > { %v245_v6 = vld [vmem:[%s244_s25] sm:$0xf]  ;;  %s579_s25 = sshll.u32 %s756_s21, 6  ;;  %s686_s21 = scalar_lea.vmem %s902_s29, 64 }
  0x1b   : > { %592 = vmatprep.subr.msk.mxu0 %vm287_vm1, %v245_v6  ;;  %s900_s9 = scalar_lea.hbm %s952_s5, %s579_s25  ;;  %p687_p12 = scmp.ne.s32.totalorder %s902_s29, %s686_s21 }
  0x1c   : > { %593 = vmatpush3.msk.msra.mxu0 %vm287_vm1, %v245_v6  ;;  %s692_s13 = scalar_lea.vmem %s691_s12, 128  ;;  %p693_p1 = scmp.lt.s32.totalorder %s902_s29, %s691_s12 }
  0x1d   : > { %595 = vmatmul.mubr.msk.f32.vlgmr.msra.gmra.mrb[0].mxu0 %vm274_vm0, %v247_v7  ;;  %p688_p13 = pnand %p687_p12, %p841_p4  ;;  %p694_p2 = scmp.lt.s32.totalorder %s692_s13, %s686_s21 }
  0x1e   : > { %597 = vmatprep.mubr.msk.f32.mxu0 %vm274_vm0, %v248_v8 }
  0x1f   : > { %p689_p0 = pneg %p688_p13  ;;  %p695_p3 = por %p694_p2, %p693_p1 }
  0x21   : > { %598 = vmatmul.mubr.msk.f32.gmra.mrb[2].mxu0 %vm274_vm0, %v249_v10  ;;  %p696_p5 = pnand %p695_p3, %p689_p0 }
  0x8f   : > { %v257_v13 = vpop.permute.xlu0 %256 }
  0x90   : > { %v267_v14 = vpop.permute.xlu1 %266 }
  0x93   : > { %v262_v15 = vpop.permute.xlu0 %261 }
  0x94   : > { %v272_v21 = vpop.permute.xlu1 %271 }
  0x97   : > { %v401_v48 = vpop.permute.xlu0 %400 }
  0xf0   : > { %v596_v16 = vpop.f32.mrb[0].mxu0 }
  0xf1   : > { %v363_v17 = vadd.f32 %v596_v16, %v262_v15  ;;  %v357_v18 = vpop.f32.mrb[1].mxu0 }
  0xf2   : > { %v358_v19 = vadd.f32 %v357_v18, %v257_v13 }
  0xf3   : > { %v381_v20 = vmul.f32 0.70710677, %v363_v17  ;;  %v377_v31 = vmul.f32 0.5, %v363_v17 }
  0xf4   : > { %v380_v22 = vmul.f32 0.70710677, %v358_v19  ;;  %v599_v23 = vpop.f32.mrb[2].mxu0  ;;  %v376_v33 = vmul.f32 0.5, %v358_v19 }
  0xf5   : > { %678 = verf.f32 %v381_v20  ;;  %v373_v24 = vadd.f32 %v599_v23, %v272_v21  ;;  %v367_v25 = vpop.f32.mrb[3].mxu0 }
  0xf6   : > { %680 = verf.f32 %v380_v22  ;;  %v368_v26 = vadd.f32 %v367_v25, %v267_v14 }
  0xf7   : > { %v383_v27 = vmul.f32 0.70710677, %v373_v24  ;;  %v379_v39 = vmul.f32 0.5, %v373_v24 }
  0xf8   : > { %v382_v28 = vmul.f32 0.70710677, %v368_v26  ;;  %v378_v41 = vmul.f32 0.5, %v368_v26 }
  0xf9   : > { %682 = verf.f32 %v383_v27 }
  0xfa   : > { %684 = verf.f32 %v382_v28 }
  0xff   : > { %v679_v29 = vpop.eup %678 }
 0x100   : > { %v681_v30 = vpop.eup %680  ;;  %v389_v32 = vadd.f32 1.0, %v679_v29 }
 0x101   : > { %v388_v34 = vadd.f32 1.0, %v681_v30 }
 0x102   : > { %v393_v35 = vmul.f32 %v389_v32, %v377_v31 }
 0x103   : > { %v683_v36 = vpop.eup %682  ;;  %v392_v37 = vmul.f32 %v388_v34, %v376_v33 }
 0x104   : > { %v685_v38 = vpop.eup %684  ;;  %v391_v40 = vadd.f32 1.0, %v683_v36 }
 0x105   : > { %v390_v42 = vadd.f32 1.0, %v685_v38  ;;  %v612_v43 = vpack.c.bf16 %v393_v35, %v392_v37 }
 0x106   : > { %v395_v44 = vmul.f32 %v391_v40, %v379_v39 }
 0x107   : > { %v394_v45 = vmul.f32 %v390_v42, %v378_v41  ;;  %613 = vmatpush3.bf16.msra.mxu1 %v612_v43 }
 0x108   : > { %614 = vmatprep.subr.bf16.mxu1 %v767_v11 }
 0x109   : > { %v615_v46 = vpack.c.bf16 %v395_v44, %v394_v45 }
 0x10b   : > { %616 = vmatpush3.bf16.msra.mxu1 %v615_v46 }
 0x10e   : > { %609 = vmatmul.mubr.msk.f32.vlgmr.msra.gmra.mrb[0].mxu1 %vm403_vm3, %v396_v47 }
 0x1e1   : > { %v473_v49 = vpop.f32.mrb[0].mxu1 }
 0x1e2   : > { %v474_v50 = vadd.f32 %v473_v49, %v401_v48  ;;  %v610_v51 = vpop.f32.mrb[1].mxu1 }
 0x1e4   : > { %478 = vst.msk [vmem:[%s237_s27] sm:$0xf] %vm477_vm4, %v474_v50 }
 0x1e5   : > { %699 = shalt.err (!%p696_p5)
}
 0x1e6   : > { %s700_s14 = scalar_lea.hbm %s900_s9, 64  ;;  %s704_s17 = scalar_lea.hbm %s952_s5, 128 }
 0x1e7   : > { %p701_p6 = scmp.ne.s32.totalorder %s900_s9, %s700_s14  ;;  %p705_p10 = scmp.lt.u32.totalorder %s900_s9, %s952_s5 }
 0x1e8   : > { %p706_p11 = scmp.lt.u32.totalorder %s704_s17, %s700_s14  ;;  %p708_p13 = scmp.lt.u32.totalorder %s700_s14, %s900_s9 }
 0x1e9   : > { %p702_p7 = pnand %p701_p6, %p841_p4 }
 0x1ea   : > { %p707_p12 = por %p706_p11, %p705_p10 }
 0x1eb   : > { %p703_p9 = pneg %p702_p7 }
 0x1ec   : > { %p709_p0 = por %p708_p13, %p707_p12 }
 0x1ee   : > { %p710_p1 = pnand %p709_p0, %p703_p9 }
 0x1f0   : > { %713 = shalt.err (!%p710_p1)
}
 0x1f1   : > { %617 = dma.vmem_to_hbm [thread:$0]  (%p841_p4), %s902_s29, 64, %s900_s9, %s480_s10  }
 0x1f2 PF: > { %p623_p2 = scmp.ge.s32.totalorder %s764_s23, 2  ;;  %s506_s27 = sand.u32 1, %s744_s18  }
 0x1f3   : > { %s507_s7 = scalar_lea.sflag [#allocation3], %s506_s27 }
 0x1f4   : > { %p620_p3 = pnand %p623_p2, %p848_p8 }
 0x1f6   : > { %739 = dma.done.wait (!%p620_p3), %s507_s7, 64  }
 0x1f7   : > { %741 = vsyncadd (!%p620_p3), %s507_s7, 4294967232  ;;  %s18_s23 = sadd.s32 1, %s764_s23   ;;  %s955_s18 = smov %s748_s19 }
 0x1f8   : > { %p15_p5 = scmp.ge.s32.totalorder %s18_s23, 4   ;;  %s956_s19 = smov %s752_s20 }
 0x1f9   : > { %s957_s20 = smov %s854_s6  ;;  %s958_s21 = smov %s760_s22 }
 0x1fa   : > { %s959_s22 = smov %s961_s26  ;;  %17 = sbr.rel (!%p15_p5) target bundleno = 4 (0x4), region = 75 }
 0x201   :  { %512 = vsyncpa [#allocation3], 1 }
 0x202   :  { %514 = vsyncpa [#allocation3 + $0x1], 1 }

</bundles_post_ra>
